<compile_context>
chip_gen: v7x
topology: tpu7x:2x2x1
jax: 0.10.0
libtpu: 0.0.40
codegen_flags: <defaults>
</compile_context>

<pallas_src>
import jax
import jax.numpy as jnp
from jax import lax
from jax.experimental import pallas as pl
from jax.experimental.pallas import tpu as pltpu

_MiB = 1024 * 1024


def _cdiv(a, b):
    return -(-a // b)


def _round_up(x, m):
    return _cdiv(x, m) * m


def _vmem_capacity_bytes():
    """Physical VMEM of the current TPU generation (conservative fallback)."""
    try:
        info = pltpu.get_tpu_info()
        cap = int(getattr(info, "vmem_capacity_bytes", 0) or 0)
        if cap > 0:
            return cap
    except Exception:
        pass
    return 64 * _MiB  # v7x per-TensorCore size: safe on every generation


def _make_kernel(cast_to, precision, n_k, f32_out):
    """Build the kernel body.

    cast_to: dtype to cast x tiles to in-register before the MXU (or None).
    n_k:     number of K grid steps (1 => single-shot, no accumulator needed).
    f32_out: output dtype is float32 (accumulate directly into o_ref).
    Returns (kernel_fn, needs_f32_scratch).
    """

    def _partial(x_ref, w_ref):
        x = x_ref[...]
        if cast_to is not None:
            x = x.astype(cast_to)          # in-vreg cast, hidden under the MXU
        # x @ W^T: contract the last dim of both operands; W stays in PyTorch
        # [out, in] layout, no transposed copy is ever materialized in HBM.
        return lax.dot_general(
            x, w_ref[...],
            dimension_numbers=(((1,), (1,)), ((), ())),
            preferred_element_type=jnp.float32,
            precision=precision)

    if n_k == 1:
        def kernel(x_ref, w_ref, b_ref, o_ref):
            o_ref[...] = (_partial(x_ref, w_ref) + b_ref[...]).astype(o_ref.dtype)
        return kernel, False

    if f32_out:
        def kernel(x_ref, w_ref, b_ref, o_ref):
            @pl.when(pl.program_id(2) == 0)
            def _init():
                o_ref[...] = jnp.broadcast_to(b_ref[...], o_ref.shape)
            o_ref[...] += _partial(x_ref, w_ref)
        return kernel, False

    def kernel(x_ref, w_ref, b_ref, o_ref, acc_ref):
        k = pl.program_id(2)

        @pl.when(k == 0)
        def _init():
            acc_ref[...] = jnp.zeros_like(acc_ref)

        acc_ref[...] += _partial(x_ref, w_ref)

        @pl.when(k == pl.num_programs(2) - 1)
        def _finalize():
            o_ref[...] = (acc_ref[...] + b_ref[...]).astype(o_ref.dtype)

    return kernel, True


def perceiver_self_output(hidden_states, weight, bias, *,
                          compute_dtype="auto", precision=None,
                          tile_m=None, tile_n=None, tile_k=None):
    """y = hidden_states @ weight.T + bias  (nn.Linear semantics).

    hidden_states: [..., C_in]
    weight:        [C_out, C_in]   (PyTorch layout, never transposed in HBM)
    bias:          [C_out]
    """
    orig_shape = hidden_states.shape
    out_dtype = hidden_states.dtype
    c_in = orig_shape[-1]
    c_out, c_in_w = weight.shape
    assert c_in_w == c_in, "weight must be [C_out, C_in]"

    x2d = hidden_states.reshape(-1, c_in)        # free: contiguous reshape
    M = x2d.shape[0]

    # ---- compute dtype ------------------------------------------------------
    if isinstance(compute_dtype, str) and compute_dtype == "auto":
        big = 2 * M * c_in * c_out >= (1 << 30)  # ~1 GFLOP: bf16 MXU worth it
        cdtype = jnp.bfloat16 if (x2d.dtype == jnp.float32 and big) else x2d.dtype
    elif compute_dtype is None:
        cdtype = x2d.dtype
    else:
        cdtype = compute_dtype
    cdtype = jnp.dtype(cdtype)
    in_dtype = jnp.dtype(x2d.dtype)
    needs_cast = cdtype != in_dtype
    x_bytes = in_dtype.itemsize
    c_bytes = cdtype.itemsize
    out_bytes = jnp.dtype(out_dtype).itemsize
    f32_out = jnp.dtype(out_dtype) == jnp.dtype(jnp.float32)

    # ---- generation-aware VMEM budgets ---------------------------------------
    cap = _vmem_capacity_bytes()
    plan_budget = max(24 * _MiB, (cap * 3) // 4)   # ~48 MiB v7x, ~96 MiB v5e/v6e
    w_budget = plan_budget // 3                    # resident-weight budget

    # ---- lane-aligned padded feature dims -------------------------------------
    K_pad = _round_up(c_in, 128)
    N_pad = _round_up(c_out, 128)

    # ---- row tile: packed-sublane multiple, >=2 tiles for megacore ------------
    sub_m = max(8, 32 // min(x_bytes, out_bytes))  # 8 f32 / 16 bf16 / 32 int8
    if tile_m is None:
        if M >= 4096:
            tile_m = 512
        elif M >= 512:
            tile_m = 256
        else:
            tile_m = _round_up(min(max(M, sub_m), 256), sub_m)
    tile_m = max(sub_m, _round_up(tile_m, sub_m))
    if _cdiv(M, tile_m) < 2 and M > sub_m:         # keep both v7x TCs busy
        tile_m = max(sub_m, _round_up(_cdiv(M, 2), sub_m))

    # ---- weight residency / N, K tiling ---------------------------------------
    if tile_n is None:
        tile_n = N_pad if N_pad * K_pad * c_bytes <= w_budget else min(N_pad, 512)
    tile_n = min(_round_up(tile_n, 128), N_pad)
    tile_n = _round_up(_cdiv(N_pad, _cdiv(N_pad, tile_n)), 128)   # even split

    if tile_k is None:
        if _cdiv(N_pad, tile_n) == 1 and N_pad * K_pad * c_bytes <= w_budget:
            tile_k = K_pad                          # fully resident weight
        else:
            # largest lane-multiple K tile whose double-buffered W tile fits
            per_k = 2 * tile_n * c_bytes
            tile_k = max(128, min(K_pad, 2048, (w_budget // per_k) // 128 * 128))
    tile_k = min(_round_up(tile_k, 128), K_pad)
    tile_k = _round_up(_cdiv(K_pad, _cdiv(K_pad, tile_k)), 128)   # even split

    # ---- shrink the plan until it fits the per-generation budget ---------------
    def _footprint(tm, tn, tk, nn, nk):
        w_bufs = 1 if (nn == 1 and nk == 1) else 2   # Buffered(1) when resident
        f = 2 * tm * tk * x_bytes                    # x tiles (double-buffered)
        f += w_bufs * tn * tk * c_bytes              # weight tiles
        f += 2 * tn * 4                              # bias (f32)
        f += 2 * tm * tn * out_bytes                 # output tiles
        if nk > 1 and not f32_out:
            f += tm * tn * 4                         # f32 accumulator scratch
        return f

    for _ in range(64):
        n_n, n_k = _cdiv(N_pad, tile_n), _cdiv(K_pad, tile_k)
        if _footprint(tile_m, tile_n, tile_k, n_n, n_k) <= plan_budget:
            break
        if tile_m > sub_m:
            tile_m = max(sub_m, _round_up(tile_m // 2, sub_m))
        elif tile_k > 512:
            tile_k = _round_up(_cdiv(K_pad, n_k + 1), 128)
        elif tile_n > 256:
            tile_n = _round_up(_cdiv(N_pad, n_n + 1), 128)
        else:
            break
    n_m = _cdiv(M, tile_m)
    n_n = _cdiv(N_pad, tile_n)
    n_k = _cdiv(K_pad, tile_k)
    N_tot = tile_n * n_n
    K_tot = tile_k * n_k
    w_resident = (n_n == 1 and n_k == 1)

    # ---- operand prep (K-only zero pad; M stays ragged) ------------------------
    # TODO(synk): in a real model, cache the padded/cast weight & bias across
    # forward calls (they are parameters) instead of re-deriving them here.
    if K_tot != c_in:
        x2d = jnp.pad(x2d, ((0, 0), (0, K_tot - c_in)))
    w_p = weight if jnp.dtype(weight.dtype) == cdtype else weight.astype(cdtype)
    if (N_tot, K_tot) != (c_out, c_in):
        w_p = jnp.pad(w_p, ((0, N_tot - c_out), (0, K_tot - c_in)))
    b_p = bias.astype(jnp.float32).reshape(1, c_out)
    if N_tot != c_out:
        b_p = jnp.pad(b_p, ((0, 0), (0, N_tot - c_out)))

    # ---- VMEM limit / cost estimate ---------------------------------------------
    foot = _footprint(tile_m, tile_n, tile_k, n_n, n_k)
    vmem_limit = max(2 * foot, 32 * _MiB)
    vmem_limit = min(vmem_limit, cap - 16 * _MiB)
    vmem_limit = int(min(max(vmem_limit, foot + 4 * _MiB), cap))

    w_passes = 1 if w_resident else n_m              # W re-streamed per row tile
    cost = pl.CostEstimate(
        flops=2 * M * K_tot * N_tot,
        bytes_accessed=(M * K_tot * x_bytes
                        + w_passes * N_tot * K_tot * c_bytes
                        + N_tot * 4
                        + M * N_tot * out_bytes),
        transcendentals=0)

    kernel, use_acc = _make_kernel(cdtype if needs_cast else None, precision,
                                   n_k, f32_out)
    scratch = [pltpu.VMEM((tile_m, tile_n), jnp.float32)] if use_acc else []

    def _run(single_buffer_w):
        w_kwargs = {}
        if single_buffer_w:
            # Constant index_map across the whole grid => no 2nd (never-refilled)
            # weight buffer; halves the resident-W footprint (matters on v7x).
            w_kwargs["pipeline_mode"] = pl.Buffered(1)
        grid_spec = pltpu.PrefetchScalarGridSpec(
            num_scalar_prefetch=0,
            grid=(n_m, n_n, n_k),
            in_specs=[
                pl.BlockSpec((tile_m, tile_k), lambda i, j, k: (i, k)),    # x
                pl.BlockSpec((tile_n, tile_k), lambda i, j, k: (j, k),     # W [out,in]
                             **w_kwargs),
                pl.BlockSpec((1, tile_n), lambda i, j, k: (0, j)),         # bias
            ],
            out_specs=pl.BlockSpec((tile_m, tile_n), lambda i, j, k: (i, j)),
            scratch_shapes=scratch)
        return pl.pallas_call(
            kernel,
            out_shape=jax.ShapeDtypeStruct((M, N_tot), out_dtype),
            grid_spec=grid_spec,
            compiler_params=pltpu.CompilerParams(
                dimension_semantics=("parallel", "parallel", "arbitrary"),
                vmem_limit_bytes=vmem_limit),
            cost_estimate=cost,
        )(x2d, w_p, b_p)

    if w_resident and hasattr(pl, "Buffered"):
        try:
            out2d = _run(True)
        except Exception:   # older/newer JAX rejecting Buffered(1): fall back
            out2d = _run(False)
    else:
        out2d = _run(False)

    out2d = out2d[:, :c_out]                     # strip N padding only
    return out2d.reshape(*orig_shape[:-1], c_out)


if __name__ == "__main__":
    key = jax.random.PRNGKey(0)
    k_x, k_w, k_b, k_x2, k_w2, k_b2 = jax.random.split(key, 6)

    # 1) small f32, resident-weight single-shot path (module's exact semantics)
    B, S, C_IN, C_OUT = 2, 8, 32, 32
    x = jax.random.normal(k_x, (B, S, C_IN), dtype=jnp.float32)
    w = jax.random.normal(k_w, (C_OUT, C_IN), dtype=jnp.float32) * 0.05
    b = jax.random.normal(k_b, (C_OUT,), dtype=jnp.float32) * 0.01
    ref = x @ w.T + b

    out = jax.block_until_ready(perceiver_self_output(x, w, b))
    assert out.shape == (B, S, C_OUT)
    assert jnp.allclose(out, ref, atol=1e-5, rtol=1e-5), "f32 resident path mismatch"

    # 2) same shapes, explicit bf16 MXU path (in-kernel cast, f32 accumulation)
    out_bf16 = jax.block_until_ready(
        perceiver_self_output(x, w, b, compute_dtype=jnp.bfloat16))
    assert out_bf16.shape == (B, S, C_OUT)
    assert jnp.allclose(out_bf16, ref, atol=3e-2, rtol=3e-2), "bf16 path mismatch"

    # 3) forced K/N tiling + ragged last row tile (f32 accumulate-into-output)
    B2, S2, C_IN2, C_OUT2 = 3, 20, 384, 256       # M = 60: not a tile multiple
    x2 = jax.random.normal(k_x2, (B2, S2, C_IN2), dtype=jnp.float32)
    w2 = jax.random.normal(k_w2, (C_OUT2, C_IN2), dtype=jnp.float32) * 0.05
    b2 = jax.random.normal(k_b2, (C_OUT2,), dtype=jnp.float32) * 0.01
    ref2 = x2 @ w2.T + b2

    out2 = jax.block_until_ready(
        perceiver_self_output(x2, w2, b2, tile_n=128, tile_k=128))
    assert out2.shape == (B2, S2, C_OUT2)
    assert jnp.allclose(out2, ref2, atol=1e-4, rtol=1e-4), "tiled f32 path mismatch"

    # 4) bf16 in / bf16 out with K tiling (scratch-accumulator path)
    x3 = x2.astype(jnp.bfloat16)
    w3 = w2.astype(jnp.bfloat16)
    ref3 = x3.astype(jnp.float32) @ w3.astype(jnp.float32).T + b2
    out3 = jax.block_until_ready(
        perceiver_self_output(x3, w3, b2, tile_n=128, tile_k=128))
    assert out3.shape == (B2, S2, C_OUT2)
    assert out3.dtype == jnp.bfloat16
    assert jnp.allclose(out3.astype(jnp.float32), ref3, atol=5e-2, rtol=5e-2), \
        "tiled bf16 path mismatch"

    print("KERNEL_OK")
</pallas_src>

<mosaic_0001>
module attributes {stable_mosaic.version = 11 : i64} {
  func.func @kernel(%arg0: i32, %arg1: i32, %arg2: i32, %arg3: memref<8x128xf32, #tpu.memory_space<vmem>>, %arg4: memref<128x128xf32, #tpu.memory_space<vmem>>, %arg5: memref<1x128xf32, #tpu.memory_space<vmem>>, %arg6: memref<8x128xf32, #tpu.memory_space<vmem>>) attributes {dimension_semantics = [#tpu.dimension_semantics<parallel>, #tpu.dimension_semantics<parallel>, #tpu.dimension_semantics<arbitrary>], iteration_bounds = array<i64: 2, 1, 1>, scalar_prefetch = 0 : i64, scratch_operands = 0 : i64, tpu.core_type = #tpu.core_type<tc>, window_params = [{transform_indices = @transform_0, window_bounds = array<i64: 8, 128>}, {pipeline_mode = #tpu.pipeline_mode<synchronous>, transform_indices = @transform_1, window_bounds = array<i64: 128, 128>}, {transform_indices = @transform_2, window_bounds = array<i64: 1, 128>}, {transform_indices = @transform_3, window_bounds = array<i64: 8, 128>}]} {
    %c0 = arith.constant 0 : index
    %c0_0 = arith.constant 0 : index
    %0 = vector.load %arg3[%c0, %c0_0] : memref<8x128xf32, #tpu.memory_space<vmem>>, vector<8x128xf32>
    %c0_1 = arith.constant 0 : index
    %c0_2 = arith.constant 0 : index
    %1 = vector.load %arg4[%c0_1, %c0_2] : memref<128x128xf32, #tpu.memory_space<vmem>>, vector<128x128xf32>
    %cst = arith.constant dense<0.000000e+00> : vector<8x128xf32>
    %2 = tpu.matmul %0, %1, %cst {dimension_numbers = #tpu.dot_dimension_numbers<[1], [1], [0], [0], [0, 0, 1, 0], [], []>} : vector<8x128xf32>, vector<128x128xf32>, vector<8x128xf32> -> vector<8x128xf32>
    %c0_3 = arith.constant 0 : index
    %c0_4 = arith.constant 0 : index
    %3 = vector.load %arg5[%c0_3, %c0_4] : memref<1x128xf32, #tpu.memory_space<vmem>>, vector<1x128xf32>
    %4 = vector.broadcast %3 : vector<1x128xf32> to vector<8x128xf32>
    %5 = arith.addf %2, %4 : vector<8x128xf32>
    %c0_5 = arith.constant 0 : index
    %c0_6 = arith.constant 0 : index
    %6 = vector.load %arg6[%c0_5, %c0_6] : memref<8x128xf32, #tpu.memory_space<vmem>>, vector<8x128xf32>
    tpu.vector_store %arg6[%c0_5, %c0_6], %5 {strides = array<i32>} : memref<8x128xf32, #tpu.memory_space<vmem>>, vector<8x128xf32>,
    return
  }
  func.func @transform_0(%arg0: i32, %arg1: i32, %arg2: i32) -> (i32, i32) {
    %c0_i32 = arith.constant 0 : i32
    return %arg0, %arg2 : i32, i32
  }
  func.func @transform_1(%arg0: i32, %arg1: i32, %arg2: i32) -> (i32, i32) {
    %c0_i32 = arith.constant 0 : i32
    return %arg1, %arg2 : i32, i32
  }
  func.func @transform_2(%arg0: i32, %arg1: i32, %arg2: i32) -> (i32, i32) {
    %c0_i32 = arith.constant 0 : i32
    %c0_i32_0 = arith.constant 0 : i32
    return %c0_i32, %arg1 : i32, i32
  }
  func.func @transform_3(%arg0: i32, %arg1: i32, %arg2: i32) -> (i32, i32) {
    %c0_i32 = arith.constant 0 : i32
    return %arg0, %arg1 : i32, i32
  }
}

module attributes {stable_mosaic.version = 11 : i64} {
  func.func @kernel(%arg0: i32, %arg1: i32, %arg2: i32, %arg3: memref<8x128xf32, #tpu.memory_space<vmem>>, %arg4: memref<128x128xf32, #tpu.memory_space<vmem>>, %arg5: memref<1x128xf32, #tpu.memory_space<vmem>>, %arg6: memref<8x128xf32, #tpu.memory_space<vmem>>) attributes {dimension_semantics = [#tpu.dimension_semantics<parallel>, #tpu.dimension_semantics<parallel>, #tpu.dimension_semantics<arbitrary>], iteration_bounds = array<i64: 2, 1, 1>, scalar_prefetch = 0 : i64, scratch_operands = 0 : i64, tpu.core_type = #tpu.core_type<tc>, window_params = [{transform_indices = @transform_0, window_bounds = array<i64: 8, 128>}, {transform_indices = @transform_1, window_bounds = array<i64: 128, 128>}, {transform_indices = @transform_2, window_bounds = array<i64: 1, 128>}, {transform_indices = @transform_3, window_bounds = array<i64: 8, 128>}]} {
    %c0 = arith.constant 0 : index
    %c0_0 = arith.constant 0 : index
    %0 = vector.load %arg3[%c0, %c0_0] : memref<8x128xf32, #tpu.memory_space<vmem>>, vector<8x128xf32>
    %c0_1 = arith.constant 0 : index
    %c0_2 = arith.constant 0 : index
    %1 = vector.load %arg4[%c0_1, %c0_2] : memref<128x128xf32, #tpu.memory_space<vmem>>, vector<128x128xf32>
    %cst = arith.constant dense<0.000000e+00> : vector<8x128xf32>
    %2 = tpu.matmul %0, %1, %cst {dimension_numbers = #tpu.dot_dimension_numbers<[1], [1], [0], [0], [0, 0, 1, 0], [], []>} : vector<8x128xf32>, vector<128x128xf32>, vector<8x128xf32> -> vector<8x128xf32>
    %c0_3 = arith.constant 0 : index
    %c0_4 = arith.constant 0 : index
    %3 = vector.load %arg5[%c0_3, %c0_4] : memref<1x128xf32, #tpu.memory_space<vmem>>, vector<1x128xf32>
    %4 = vector.broadcast %3 : vector<1x128xf32> to vector<8x128xf32>
    %5 = arith.addf %2, %4 : vector<8x128xf32>
    %c0_5 = arith.constant 0 : index
    %c0_6 = arith.constant 0 : index
    %6 = vector.load %arg6[%c0_5, %c0_6] : memref<8x128xf32, #tpu.memory_space<vmem>>, vector<8x128xf32>
    tpu.vector_store %arg6[%c0_5, %c0_6], %5 {strides = array<i32>} : memref<8x128xf32, #tpu.memory_space<vmem>>, vector<8x128xf32>,
    return
  }
  func.func @transform_0(%arg0: i32, %arg1: i32, %arg2: i32) -> (i32, i32) {
    %c0_i32 = arith.constant 0 : i32
    return %arg0, %arg2 : i32, i32
  }
  func.func @transform_1(%arg0: i32, %arg1: i32, %arg2: i32) -> (i32, i32) {
    %c0_i32 = arith.constant 0 : i32
    return %arg1, %arg2 : i32, i32
  }
  func.func @transform_2(%arg0: i32, %arg1: i32, %arg2: i32) -> (i32, i32) {
    %c0_i32 = arith.constant 0 : i32
    %c0_i32_0 = arith.constant 0 : i32
    return %c0_i32, %arg1 : i32, i32
  }
  func.func @transform_3(%arg0: i32, %arg1: i32, %arg2: i32) -> (i32, i32) {
    %c0_i32 = arith.constant 0 : i32
    return %arg0, %arg1 : i32, i32
  }
}

</mosaic_0001>

<bundles_post_ra>
// kernel: tpu_custom_call.1
= control target key start
LH: loop header
LB: loop body
LE: loop exit
PB: predicated region body
PF: predicated region fallthrough
CT: control target
= control target key end

     0   :  { %8 = vsyncpa [#allocation3], 0  ;;  %s1039_s0 = inlined_call_operand.hbm [shape: f32[16,128], index: 0, kind: input, shape index: {}]   ;;  %s1040_s1 = inlined_call_operand.hbm [shape: f32[128,128], index: 1, kind: input, shape index: {}]   ;;  %s1041_s2 = inlined_call_operand.vmem [shape: f32[1,128], index: 2, kind: input, shape index: {}]   ;;  %s1042_s3 = inlined_call_operand.hbm [shape: f32[16,128], index: 3, kind: output, shape index: {}]  }
   0x1   :  { %10 = vsyncpa [#allocation3 + $0x1], 0 }
   0x2   :  { %11 = vsyncpa [#allocation6], 0 }
   0x3   :  { %12 = vsyncpa [#allocation4], 0 }
   0x4   :  { %14 = vsyncpa [#allocation4 + $0x1], 0  ;;  %s815_s12 = smov 0   ;;  %s817_s13 = smov 0  }
   0x5   :  { %s819_s14 = smov 0   ;;  %s821_s15 = smov 0  }
   0x6   :  { %s823_s16 = smov 0   ;;  %s825_s17 = smov 0  }
   0x7 LB: > { %s470_s18 = sadd.s32 4294967295, %s785_s17   ;;  %s471_s19 = sadd.s32 4294967294, %s785_s17   ;;  %s785_s17 = sphi %s825_s17, %s20_s17   ;;  %s781_s16 = sphi %s823_s16, %s1066_s16   ;;  %s777_s15 = sphi %s821_s15, %s1065_s15   ;;  %s773_s14 = sphi %s819_s14, %s1064_s14   ;;  %s769_s13 = sphi %s817_s13, %s1063_s13   ;;  %s765_s12 = sphi %s815_s12, %s1062_s12  }
   0x8   : > { %p61_p0 = scmp.ne.s32.totalorder %s769_s13, %s765_s12  ;;  %p849_p1 = scmp.eq.s32.totalorder %s470_s18, 0 }
   0x9   : > { %p853_p2 = scmp.eq.s32.totalorder %s470_s18, 1  ;;  %p147_p3 = scmp.eq.s32.totalorder %s471_s19, 1 }
   0xa   : > { %s1047_s20 = scalar_select %p849_p1, 1, 0 }
   0xb   : > { %s1048_s21 = scalar_select %p853_p2, 1, 0 }
   0xc   : > { %p859_p4 = por %p849_p1, %p61_p0  ;;  %p472_p5 = scmp.ge.s32.totalorder %s785_s17, 1 }
   0xd   : > { %p864_p6 = por %p147_p3, %p61_p0  ;;  %p154_p7 = scmp.lt.s32.totalorder %s785_s17, 3 }
   0xe   : > { %s1049_s22 = scalar_select %p859_p4, 1, 0 }
   0xf   : > { %s1050_s23 = scalar_select %p864_p6, 1, 0 }
  0x10   : > { %p869_p8 = pnand %p472_p5, %p154_p7  ;;  %s787_s25 = smov [#allocation5]  }
  0x11   : > { %s170_s26 = sshll.u32 %s787_s25, 4  ;;  %s39_s28 = sadd.s32 1, %s781_s16  ;;  %s171_s26 = int_to_ptr.vmem [resolvable:$true] %s170_s26 }
  0x12   : > { %s1051_s24 = scalar_select %p869_p8, 1, 0 }
  0x13   : > { %p571_p9 = pneg %p869_p8  ;;  %s641_s4 = scalar_lea.hbm %s1040_s1, 2048 }
  0x14   : > { %p642_p12 = scmp.ne.s32.totalorder %s1040_s1, %s641_s4  ;;  %p648_p5 = scmp.lt.u32.totalorder %s641_s4, %s1040_s1 }
  0x15   : > { %p878_p11 = pnand %p571_p9, %p849_p1 }
  0x17   : > { %p643_p13 = pneg %p878_p11 }
  0x19   : > { %p644_p0 = pnand %p643_p13, %p642_p12 }
  0x1b   : > { %p645_p3 = pneg %p644_p0 }
  0x1d   : > { %p650_p7 = pnand %p648_p5, %p645_p3 }
  0x1f   : > { %653 = shalt.err (!%p650_p7)
}
  0x20   : > { %s654_s9 = scalar_lea.vmem %s171_s26, 2048  ;;  %p662_p1 = scmp.lt.s32.totalorder %s171_s26, %s171_s26 }
  0x21   : > { %p655_p9 = scmp.ne.s32.totalorder %s171_s26, %s654_s9  ;;  %p663_p4 = scmp.lt.s32.totalorder %s654_s9, %s654_s9 }
  0x23   : > { %p657_p10 = pnand %p655_p9, %p643_p13  ;;  %p664_p8 = por %p663_p4, %p662_p1 }
  0x25   : > { %p658_p6 = pneg %p657_p10 }
  0x27   : > { %p665_p2 = pnand %p664_p8, %p658_p6 }
  0x29   : > { %668 = shalt.err (!%p665_p2)
}
  0x2a   : > { %s788_s10 = smov 128   ;;  %s789_s11 = smov 8  }
  0x2b   : > { %574 = dma.hbm_to_vmem [thread:$0]  (!%p878_p11), %s1040_s1, 2048, %s171_s26, [#allocation6], %s788_s10, %s788_s10, %s789_s11  }
  0x2c   : > { %p41_p1 = scmp.ge.s32.totalorder %s39_s28, 2  ;;  %s48_s25 = sadd.s32 1, %s773_s14 }
  0x2d   : > { %p55_p2 = scmp.ne.s32.totalorder %s773_s14, %s769_s13  ;;  %p56_p4 = scmp.eq.s32.totalorder %s785_s17, 0 }
  0x2e   : > { %s1068_s28 = smov (%p41_p1, %s39_s28), 0  ;;  %p1054_p8 = scmp.ne.s32.totalorder %s1048_s21, 0 }
  0x2f   : > { %p905_p6 = por %p56_p4, %p55_p2  ;;  %s43_s27 = ssub.s32 %s781_s16, %s1068_s28 }
  0x30   : > { %p911_p10 = por %p1054_p8, %p55_p2  ;;  %p584_p12 = scmp.lt.s32.totalorder %s785_s17, 2 }
  0x31   : > { %p46_p11 = scmp.eq.s32.totalorder %s43_s27, 0  ;;  %s190_s26 = sand.u32 1, %s773_s14  }
  0x32   : > { %s476_s4 = sshll.u32 %s190_s26, 3  ;;  %s477_s6 = sshll.u32 %s781_s16, 7 }
  0x33   : > { %s920_s5 = scalar_select %p46_p11, %s773_s14, %s48_s25  }
  0x34   : > { %s926_s9 = scalar_lea.hbm %s1039_s0, %s477_s6  ;;  %s194_s21 = scalar_lea.vmem [#allocation2], %s476_s4 }
  0x35   : > { %s202_s10 = sshll.u32 %s194_s21, 4  ;;  %p932_p13 = pnand %p584_p12, %p905_p6  ;;  %s928_s10 = int_to_ptr.vmem [resolvable:$true] %s202_s10 }
  0x36   : > { %s191_s18 = scalar_lea.sflag [#allocation3], %s190_s26  ;;  %s669_s19 = scalar_lea.hbm %s926_s9, 128 }
  0x37   : > { %p670_p0 = scmp.ne.s32.totalorder %s926_s9, %s669_s19  ;;  %p671_p3 = pneg %p932_p13 }
  0x38   : > { %s674_s4 = scalar_lea.hbm %s1039_s0, 256  ;;  %p675_p9 = scmp.lt.u32.totalorder %s926_s9, %s1039_s0 }
  0x39   : > { %p672_p5 = pnand %p671_p3, %p670_p0  ;;  %p676_p1 = scmp.lt.u32.totalorder %s674_s4, %s669_s19 }
  0x3a   : > { %p678_p4 = scmp.lt.u32.totalorder %s669_s19, %s926_s9 }
  0x3b   : > { %p673_p7 = pneg %p672_p5  ;;  %p677_p2 = por %p676_p1, %p675_p9 }
  0x3d   : > { %p679_p6 = por %p678_p4, %p677_p2 }
  0x3f   : > { %p680_p8 = pnand %p679_p6, %p673_p7 }
  0x41   : > { %683 = shalt.err (!%p680_p8)
}
  0x42   : > { %s684_s26 = scalar_lea.vmem %s928_s10, 128  ;;  %s790_s7 = smov [#allocation2]  }
  0x43   : > { %p685_p12 = scmp.ne.s32.totalorder %s928_s10, %s684_s26  ;;  %s689_s8 = sshll.u32 %s790_s7, 4  ;;  %s690_s8 = int_to_ptr.vmem [resolvable:$false] %s689_s8 }
  0x44   : > { %s691_s21 = scalar_lea.vmem %s690_s8, 256  ;;  %p692_p5 = scmp.lt.s32.totalorder %s928_s10, %s690_s8 }
  0x45   : > { %p687_p11 = pnand %p685_p12, %p671_p3  ;;  %p693_p9 = scmp.lt.s32.totalorder %s691_s21, %s684_s26 }
  0x47   : > { %p688_p0 = pneg %p687_p11  ;;  %p694_p1 = por %p693_p9, %p692_p5 }
  0x49   : > { %p695_p2 = pnand %p694_p1, %p688_p0 }
  0x4b   : > { %698 = shalt.err (!%p695_p2)
}
  0x4c   : > { %578 = dma.hbm_to_vmem [thread:$0]  (!%p932_p13), %s926_s9, 128, %s928_s10, %s191_s18  }
  0x4d   : > { %p1057_p7 = scmp.ne.s32.totalorder %s1051_s24, 0 }
  0x4e   : > { %s964_s19 = sand.u32 (!%p1057_p7), 1, %s769_s13   ;;  %p1058_p3 = scmp.ne.s32.totalorder (!%p1057_p7), %s1049_s22, 0 }
  0x4f   : > { %211 = sbr.rel (%p1057_p7) target bundleno = 385 (0x181), region = 32  ;;  %s479_s25 = sshll.u32 (!%p1057_p7), %s964_s19, 3 }
  0x50   : > { %s214_s27 = scalar_lea.sflag (!%p1057_p7), [#allocation3], %s964_s19  ;;  %s970_s4 = scalar_lea.vmem (!%p1057_p7), [#allocation2], %s479_s25 }
  0x56   : > { %752 = dma.done.wait (%p1058_p3), %s214_s27, 128  }
  0x57   : > { %754 = vsyncadd (%p1058_p3), %s214_s27, 4294967168  ;;  %p1059_p13 = scmp.ne.s32.totalorder %s1047_s20, 0 }
  0x59   : > { %756 = dma.done.wait (%p1059_p13), [#allocation6], 2048  }
  0x5a   : > { %758 = vsyncadd (%p1059_p13), [#allocation6], 4294965248  ;;  %v791_v0 = vmov 0.0|0.0   ;;  %vm792_vm0 = vmmov 0   ;;  %v793_v1 = vmov 0.0   ;;  %v252_v2 = vld [vmem:[#allocation5] sm:$0xff] }
  0x5b   : > { %539 = vmatprep.subr.bf16.mxu0 %v791_v0  ;;  %536 = vmatprep.mubr.msk.f32.mxu0 %vm792_vm0, %v793_v1  ;;  %v253_v3 = vld [vmem:[#allocation5 + $0x8] sm:$0xff]  ;;  %v254_v5 = vld [vmem:[#allocation5 + $0x10] sm:$0xff]  ;;  %v255_v6 = vld [vmem:[#allocation5 + $0x18] sm:$0xff]  ;;  %s484_s24 = sshll.u32 %s777_s15, 7  ;;  %s246_s9 = scalar_lea.vmem [#allocation7], %s479_s25 }
  0x5c   : > { %v540_v4 = vpack.c.bf16 %v253_v3, %v252_v2  ;;  %v543_v7 = vpack.c.bf16 %v255_v6, %v254_v5  ;;  %v256_v8 = vld [vmem:[#allocation5 + $0x20] sm:$0xff]  ;;  %v257_v9 = vld [vmem:[#allocation5 + $0x28] sm:$0xff]  ;;  %v258_v11 = vld [vmem:[#allocation5 + $0x30] sm:$0xff]  ;;  %s361_s10 = sshll.u32 %s246_s9, 4  ;;  %s990_s29 = scalar_lea.hbm %s1042_s3, %s484_s24  ;;  %s992_s10 = int_to_ptr.vmem [resolvable:$true] %s361_s10 }
  0x5d   : > { %v546_v10 = vpack.c.bf16 %v257_v9, %v256_v8  ;;  %v259_v12 = vld [vmem:[#allocation5 + $0x38] sm:$0xff]  ;;  %v260_v14 = vld [vmem:[#allocation5 + $0x40] sm:$0xff]  ;;  %v261_v15 = vld [vmem:[#allocation5 + $0x48] sm:$0xff]  ;;  %s347_s6 = scalar_lea.sflag [#allocation4], %s964_s19  ;;  %s699_s26 = scalar_lea.vmem %s992_s10, 128 }
  0x5e   : > { %541 = vmatpush3.bf16.xpose.msra.mxu0 %v540_v4  ;;  %v549_v13 = vpack.c.bf16 %v259_v12, %v258_v11  ;;  %v552_v16 = vpack.c.bf16 %v261_v15, %v260_v14  ;;  %v262_v17 = vld [vmem:[#allocation5 + $0x50] sm:$0xff]  ;;  %v263_v18 = vld [vmem:[#allocation5 + $0x58] sm:$0xff]  ;;  %v264_v20 = vld [vmem:[#allocation5 + $0x60] sm:$0xff]  ;;  %p700_p4 = scmp.ne.s32.totalorder %s992_s10, %s699_s26  ;;  %s794_s15 = smov [#allocation7]  }
  0x5f   : > { %542 = vmatprep.subr.bf16.mxu0 %v791_v0  ;;  %v555_v19 = vpack.c.bf16 %v263_v18, %v262_v17  ;;  %v265_v21 = vld [vmem:[#allocation5 + $0x68] sm:$0xff]  ;;  %v266_v23 = vld [vmem:[#allocation5 + $0x70] sm:$0xff]  ;;  %v267_v24 = vld [vmem:[#allocation5 + $0x78] sm:$0xff]  ;;  %s703_s7 = sshll.u32 %s794_s15, 4  ;;  %s704_s7 = int_to_ptr.vmem [resolvable:$false] %s703_s7 }
  0x60   : > { %v558_v22 = vpack.c.bf16 %v265_v21, %v264_v20  ;;  %v561_v25 = vpack.c.bf16 %v267_v24, %v266_v23  ;;  %v251_v26 = vld [vmem:[%s970_s4] sm:$0xff]  ;;  %p701_p6 = pnand %p700_p4, %p911_p10  ;;  %s705_s8 = scalar_lea.vmem %s704_s7, 256 }
  0x61   : > { %v482_v27 = vld [vmem:[%s1041_s2] ss:$0 sm:$0xff]  ;;  %p706_p12 = scmp.lt.s32.totalorder %s992_s10, %s704_s7  ;;  %p707_p11 = scmp.lt.s32.totalorder %s705_s8, %s699_s26 }
  0x62   : > { %p702_p8 = pneg %p701_p6 }
  0x63   : > { %p708_p0 = por %p707_p11, %p706_p12 }
  0x65   : > { %p709_p5 = pnand %p708_p0, %p702_p8 }
  0x66   : > { %544 = vmatpush3.bf16.xpose.msra.mxu0 %v543_v7 }
  0x67   : > { %545 = vmatprep.subr.bf16.mxu0 %v791_v0 }
  0x6e   : > { %547 = vmatpush3.bf16.xpose.msra.mxu0 %v546_v10 }
  0x6f   : > { %548 = vmatprep.subr.bf16.mxu0 %v791_v0 }
  0x76   : > { %550 = vmatpush3.bf16.xpose.msra.mxu0 %v549_v13 }
  0x77   : > { %551 = vmatprep.subr.bf16.mxu0 %v791_v0 }
  0x7e   : > { %553 = vmatpush3.bf16.xpose.msra.mxu0 %v552_v16 }
  0x7f   : > { %554 = vmatprep.subr.bf16.mxu0 %v791_v0 }
  0x86   : > { %556 = vmatpush3.bf16.xpose.msra.mxu0 %v555_v19 }
  0x87   : > { %557 = vmatprep.subr.bf16.mxu0 %v791_v0 }
  0x8e   : > { %559 = vmatpush3.bf16.xpose.msra.mxu0 %v558_v22 }
  0x8f   : > { %560 = vmatprep.subr.bf16.mxu0 %v791_v0 }
  0x96   : > { %562 = vmatpush3.bf16.xpose.msra.mxu0 %v561_v25 }
  0x9d   : > { %537 = vmatmul.mubr.f32.vlgmr.msra.gmra.mrb[0].mxu0 %v251_v26 }
 0x170   : > { %v341_v28 = vpop.f32.mrb[0].mxu0 }
 0x171   : > { %v342_v29 = vadd.f32 %v482_v27, %v341_v28  ;;  %v538_v30 = vpop.f32.mrb[1].mxu0 }
 0x173   : > { %345 = vst [vmem:[%s246_s9] sm:$0xff] %v342_v29 }
 0x174   : > { %712 = shalt.err (!%p709_p5)
}
 0x175   : > { %s713_s21 = scalar_lea.hbm %s990_s29, 128  ;;  %s717_s27 = scalar_lea.hbm %s1042_s3, 256 }
 0x176   : > { %p714_p9 = scmp.ne.s32.totalorder %s990_s29, %s713_s21  ;;  %p718_p7 = scmp.lt.u32.totalorder %s990_s29, %s1042_s3 }
 0x177   : > { %p719_p3 = scmp.lt.u32.totalorder %s717_s27, %s713_s21  ;;  %p721_p4 = scmp.lt.u32.totalorder %s713_s21, %s990_s29 }
 0x178   : > { %p715_p1 = pnand %p714_p9, %p911_p10 }
 0x179   : > { %p720_p13 = por %p719_p3, %p718_p7 }
 0x17a   : > { %p716_p2 = pneg %p715_p1 }
 0x17b   : > { %p722_p6 = por %p721_p4, %p720_p13 }
 0x17d   : > { %p723_p8 = pnand %p722_p6, %p716_p2 }
 0x17f   : > { %726 = shalt.err (!%p723_p8)
}
 0x180   : > { %569 = dma.vmem_to_hbm [thread:$0]  (%p911_p10), %s992_s10, 128, %s990_s29, %s347_s6  }
 0x181 PF: > { %s373_s22 = sand.u32 1, %s765_s12   ;;  %p1060_p12 = scmp.ne.s32.totalorder %s1050_s23, 0 }
 0x182   : > { %p1061_p11 = scmp.ge.s32.totalorder %s785_s17, 2  ;;  %s374_s24 = scalar_lea.sflag [#allocation4], %s373_s22 }
 0x184   : > { %p580_p0 = pnand %p1061_p11, %p1060_p12 }
 0x186   : > { %760 = dma.done.wait (!%p580_p0), %s374_s24, 128  }
 0x187   : > { %762 = vsyncadd (!%p580_p0), %s374_s24, 4294967168  ;;  %s20_s17 = sadd.s32 1, %s785_s17   ;;  %s1062_s12 = smov %s769_s13 }
 0x188   : > { %p17_p5 = scmp.ge.s32.totalorder %s20_s17, 4   ;;  %s1063_s13 = smov %s773_s14 }
 0x189   : > { %s1064_s14 = smov %s920_s5  ;;  %s1065_s15 = smov %s781_s16 }
 0x18a   : > { %s1066_s16 = smov %s1068_s28  ;;  %19 = sbr.rel (!%p17_p5) target bundleno = 7 (0x7), region = 85 }
 0x191   :  { %379 = vsyncpa [#allocation3], 1 }
 0x192   :  { %381 = vsyncpa [#allocation3 + $0x1], 1 }
 0x193   :  { %382 = vsyncpa [#allocation6], 1 }
 0x194   :  { %383 = vsyncpa [#allocation4], 1 }
 0x195   :  { %385 = vsyncpa [#allocation4 + $0x1], 1 }

// kernel: tpu_custom_call.1
= control target key start
LH: loop header
LB: loop body
LE: loop exit
PB: predicated region body
PF: predicated region fallthrough
CT: control target
= control target key end

     0   :  { %8 = vsyncpa [#allocation3], 0  ;;  %s1039_s0 = inlined_call_operand.hbm [shape: f32[16,128], index: 0, kind: input, shape index: {}]   ;;  %s1040_s1 = inlined_call_operand.hbm [shape: f32[128,128], index: 1, kind: input, shape index: {}]   ;;  %s1041_s2 = inlined_call_operand.vmem [shape: f32[1,128], index: 2, kind: input, shape index: {}]   ;;  %s1042_s3 = inlined_call_operand.hbm [shape: f32[16,128], index: 3, kind: output, shape index: {}]  }
   0x1   :  { %10 = vsyncpa [#allocation3 + $0x1], 0 }
   0x2   :  { %11 = vsyncpa [#allocation6], 0 }
   0x3   :  { %12 = vsyncpa [#allocation4], 0 }
   0x4   :  { %14 = vsyncpa [#allocation4 + $0x1], 0  ;;  %s815_s12 = smov 0   ;;  %s817_s13 = smov 0  }
   0x5   :  { %s819_s14 = smov 0   ;;  %s821_s15 = smov 0  }
   0x6   :  { %s823_s16 = smov 0   ;;  %s825_s17 = smov 0  }
   0x7 LB: > { %s470_s18 = sadd.s32 4294967295, %s785_s17   ;;  %s471_s19 = sadd.s32 4294967294, %s785_s17   ;;  %s785_s17 = sphi %s825_s17, %s20_s17   ;;  %s781_s16 = sphi %s823_s16, %s1066_s16   ;;  %s777_s15 = sphi %s821_s15, %s1065_s15   ;;  %s773_s14 = sphi %s819_s14, %s1064_s14   ;;  %s769_s13 = sphi %s817_s13, %s1063_s13   ;;  %s765_s12 = sphi %s815_s12, %s1062_s12  }
   0x8   : > { %p61_p0 = scmp.ne.s32.totalorder %s769_s13, %s765_s12  ;;  %p849_p1 = scmp.eq.s32.totalorder %s470_s18, 0 }
   0x9   : > { %p853_p2 = scmp.eq.s32.totalorder %s470_s18, 1  ;;  %p147_p3 = scmp.eq.s32.totalorder %s471_s19, 1 }
   0xa   : > { %s1047_s20 = scalar_select %p849_p1, 1, 0 }
   0xb   : > { %s1048_s21 = scalar_select %p853_p2, 1, 0 }
   0xc   : > { %p859_p4 = por %p849_p1, %p61_p0  ;;  %p472_p5 = scmp.ge.s32.totalorder %s785_s17, 1 }
   0xd   : > { %p864_p6 = por %p147_p3, %p61_p0  ;;  %p154_p7 = scmp.lt.s32.totalorder %s785_s17, 3 }
   0xe   : > { %s1049_s22 = scalar_select %p859_p4, 1, 0 }
   0xf   : > { %s1050_s23 = scalar_select %p864_p6, 1, 0 }
  0x10   : > { %p869_p8 = pnand %p472_p5, %p154_p7  ;;  %s787_s25 = smov [#allocation5]  }
  0x11   : > { %s170_s26 = sshll.u32 %s787_s25, 4  ;;  %s39_s28 = sadd.s32 1, %s781_s16  ;;  %s171_s26 = int_to_ptr.vmem [resolvable:$true] %s170_s26 }
  0x12   : > { %s1051_s24 = scalar_select %p869_p8, 1, 0 }
  0x13   : > { %p571_p9 = pneg %p869_p8  ;;  %s641_s4 = scalar_lea.hbm %s1040_s1, 2048 }
  0x14   : > { %p642_p12 = scmp.ne.s32.totalorder %s1040_s1, %s641_s4  ;;  %p648_p5 = scmp.lt.u32.totalorder %s641_s4, %s1040_s1 }
  0x15   : > { %p878_p11 = pnand %p571_p9, %p849_p1 }
  0x17   : > { %p643_p13 = pneg %p878_p11 }
  0x19   : > { %p644_p0 = pnand %p643_p13, %p642_p12 }
  0x1b   : > { %p645_p3 = pneg %p644_p0 }
  0x1d   : > { %p650_p7 = pnand %p648_p5, %p645_p3 }
  0x1f   : > { %653 = shalt.err (!%p650_p7)
}
  0x20   : > { %s654_s9 = scalar_lea.vmem %s171_s26, 2048  ;;  %p662_p1 = scmp.lt.s32.totalorder %s171_s26, %s171_s26 }
  0x21   : > { %p655_p9 = scmp.ne.s32.totalorder %s171_s26, %s654_s9  ;;  %p663_p4 = scmp.lt.s32.totalorder %s654_s9, %s654_s9 }
  0x23   : > { %p657_p10 = pnand %p655_p9, %p643_p13  ;;  %p664_p8 = por %p663_p4, %p662_p1 }
  0x25   : > { %p658_p6 = pneg %p657_p10 }
  0x27   : > { %p665_p2 = pnand %p664_p8, %p658_p6 }
  0x29   : > { %668 = shalt.err (!%p665_p2)
}
  0x2a   : > { %s788_s10 = smov 128   ;;  %s789_s11 = smov 8  }
  0x2b   : > { %574 = dma.hbm_to_vmem [thread:$0]  (!%p878_p11), %s1040_s1, 2048, %s171_s26, [#allocation6], %s788_s10, %s788_s10, %s789_s11  }
  0x2c   : > { %p41_p1 = scmp.ge.s32.totalorder %s39_s28, 2  ;;  %s48_s25 = sadd.s32 1, %s773_s14 }
  0x2d   : > { %p55_p2 = scmp.ne.s32.totalorder %s773_s14, %s769_s13  ;;  %p56_p4 = scmp.eq.s32.totalorder %s785_s17, 0 }
  0x2e   : > { %s1068_s28 = smov (%p41_p1, %s39_s28), 0  ;;  %p1054_p8 = scmp.ne.s32.totalorder %s1048_s21, 0 }
  0x2f   : > { %p905_p6 = por %p56_p4, %p55_p2  ;;  %s43_s27 = ssub.s32 %s781_s16, %s1068_s28 }
  0x30   : > { %p911_p10 = por %p1054_p8, %p55_p2  ;;  %p584_p12 = scmp.lt.s32.totalorder %s785_s17, 2 }
  0x31   : > { %p46_p11 = scmp.eq.s32.totalorder %s43_s27, 0  ;;  %s190_s26 = sand.u32 1, %s773_s14  }
  0x32   : > { %s476_s4 = sshll.u32 %s190_s26, 3  ;;  %s477_s6 = sshll.u32 %s781_s16, 7 }
  0x33   : > { %s920_s5 = scalar_select %p46_p11, %s773_s14, %s48_s25  }
  0x34   : > { %s926_s9 = scalar_lea.hbm %s1039_s0, %s477_s6  ;;  %s194_s21 = scalar_lea.vmem [#allocation2], %s476_s4 }
  0x35   : > { %s202_s10 = sshll.u32 %s194_s21, 4  ;;  %p932_p13 = pnand %p584_p12, %p905_p6  ;;  %s928_s10 = int_to_ptr.vmem [resolvable:$true] %s202_s10 }
  0x36   : > { %s191_s18 = scalar_lea.sflag [#allocation3], %s190_s26  ;;  %s669_s19 = scalar_lea.hbm %s926_s9, 128 }
  0x37   : > { %p670_p0 = scmp.ne.s32.totalorder %s926_s9, %s669_s19  ;;  %p671_p3 = pneg %p932_p13 }
  0x38   : > { %s674_s4 = scalar_lea.hbm %s1039_s0, 256  ;;  %p675_p9 = scmp.lt.u32.totalorder %s926_s9, %s1039_s0 }
  0x39   : > { %p672_p5 = pnand %p671_p3, %p670_p0  ;;  %p676_p1 = scmp.lt.u32.totalorder %s674_s4, %s669_s19 }
  0x3a   : > { %p678_p4 = scmp.lt.u32.totalorder %s669_s19, %s926_s9 }
  0x3b   : > { %p673_p7 = pneg %p672_p5  ;;  %p677_p2 = por %p676_p1, %p675_p9 }
  0x3d   : > { %p679_p6 = por %p678_p4, %p677_p2 }
  0x3f   : > { %p680_p8 = pnand %p679_p6, %p673_p7 }
  0x41   : > { %683 = shalt.err (!%p680_p8)
}
  0x42   : > { %s684_s26 = scalar_lea.vmem %s928_s10, 128  ;;  %s790_s7 = smov [#allocation2]  }
  0x43   : > { %p685_p12 = scmp.ne.s32.totalorder %s928_s10, %s684_s26  ;;  %s689_s8 = sshll.u32 %s790_s7, 4  ;;  %s690_s8 = int_to_ptr.vmem [resolvable:$false] %s689_s8 }
  0x44   : > { %s691_s21 = scalar_lea.vmem %s690_s8, 256  ;;  %p692_p5 = scmp.lt.s32.totalorder %s928_s10, %s690_s8 }
  0x45   : > { %p687_p11 = pnand %p685_p12, %p671_p3  ;;  %p693_p9 = scmp.lt.s32.totalorder %s691_s21, %s684_s26 }
  0x47   : > { %p688_p0 = pneg %p687_p11  ;;  %p694_p1 = por %p693_p9, %p692_p5 }
  0x49   : > { %p695_p2 = pnand %p694_p1, %p688_p0 }
  0x4b   : > { %698 = shalt.err (!%p695_p2)
}
  0x4c   : > { %578 = dma.hbm_to_vmem [thread:$0]  (!%p932_p13), %s926_s9, 128, %s928_s10, %s191_s18  }
  0x4d   : > { %p1057_p7 = scmp.ne.s32.totalorder %s1051_s24, 0 }
  0x4e   : > { %s964_s19 = sand.u32 (!%p1057_p7), 1, %s769_s13   ;;  %p1058_p3 = scmp.ne.s32.totalorder (!%p1057_p7), %s1049_s22, 0 }
  0x4f   : > { %211 = sbr.rel (%p1057_p7) target bundleno = 385 (0x181), region = 32  ;;  %s479_s25 = sshll.u32 (!%p1057_p7), %s964_s19, 3 }
  0x50   : > { %s214_s27 = scalar_lea.sflag (!%p1057_p7), [#allocation3], %s964_s19  ;;  %s970_s4 = scalar_lea.vmem (!%p1057_p7), [#allocation2], %s479_s25 }
  0x56   : > { %752 = dma.done.wait (%p1058_p3), %s214_s27, 128  }
  0x57   : > { %754 = vsyncadd (%p1058_p3), %s214_s27, 4294967168  ;;  %p1059_p13 = scmp.ne.s32.totalorder %s1047_s20, 0 }
  0x59   : > { %756 = dma.done.wait (%p1059_p13), [#allocation6], 2048  }
  0x5a   : > { %758 = vsyncadd (%p1059_p13), [#allocation6], 4294965248  ;;  %v791_v0 = vmov 0.0|0.0   ;;  %vm792_vm0 = vmmov 0   ;;  %v793_v1 = vmov 0.0   ;;  %v252_v2 = vld [vmem:[#allocation5] sm:$0xff] }
  0x5b   : > { %539 = vmatprep.subr.bf16.mxu0 %v791_v0  ;;  %536 = vmatprep.mubr.msk.f32.mxu0 %vm792_vm0, %v793_v1  ;;  %v253_v3 = vld [vmem:[#allocation5 + $0x8] sm:$0xff]  ;;  %v254_v5 = vld [vmem:[#allocation5 + $0x10] sm:$0xff]  ;;  %v255_v6 = vld [vmem:[#allocation5 + $0x18] sm:$0xff]  ;;  %s484_s24 = sshll.u32 %s777_s15, 7  ;;  %s246_s9 = scalar_lea.vmem [#allocation7], %s479_s25 }
  0x5c   : > { %v540_v4 = vpack.c.bf16 %v253_v3, %v252_v2  ;;  %v543_v7 = vpack.c.bf16 %v255_v6, %v254_v5  ;;  %v256_v8 = vld [vmem:[#allocation5 + $0x20] sm:$0xff]  ;;  %v257_v9 = vld [vmem:[#allocation5 + $0x28] sm:$0xff]  ;;  %v258_v11 = vld [vmem:[#allocation5 + $0x30] sm:$0xff]  ;;  %s361_s10 = sshll.u32 %s246_s9, 4  ;;  %s990_s29 = scalar_lea.hbm %s1042_s3, %s484_s24  ;;  %s992_s10 = int_to_ptr.vmem [resolvable:$true] %s361_s10 }
  0x5d   : > { %v546_v10 = vpack.c.bf16 %v257_v9, %v256_v8  ;;  %v259_v12 = vld [vmem:[#allocation5 + $0x38] sm:$0xff]  ;;  %v260_v14 = vld [vmem:[#allocation5 + $0x40] sm:$0xff]  ;;  %v261_v15 = vld [vmem:[#allocation5 + $0x48] sm:$0xff]  ;;  %s347_s6 = scalar_lea.sflag [#allocation4], %s964_s19  ;;  %s699_s26 = scalar_lea.vmem %s992_s10, 128 }
  0x5e   : > { %541 = vmatpush3.bf16.xpose.msra.mxu0 %v540_v4  ;;  %v549_v13 = vpack.c.bf16 %v259_v12, %v258_v11  ;;  %v552_v16 = vpack.c.bf16 %v261_v15, %v260_v14  ;;  %v262_v17 = vld [vmem:[#allocation5 + $0x50] sm:$0xff]  ;;  %v263_v18 = vld [vmem:[#allocation5 + $0x58] sm:$0xff]  ;;  %v264_v20 = vld [vmem:[#allocation5 + $0x60] sm:$0xff]  ;;  %p700_p4 = scmp.ne.s32.totalorder %s992_s10, %s699_s26  ;;  %s794_s15 = smov [#allocation7]  }
  0x5f   : > { %542 = vmatprep.subr.bf16.mxu0 %v791_v0  ;;  %v555_v19 = vpack.c.bf16 %v263_v18, %v262_v17  ;;  %v265_v21 = vld [vmem:[#allocation5 + $0x68] sm:$0xff]  ;;  %v266_v23 = vld [vmem:[#allocation5 + $0x70] sm:$0xff]  ;;  %v267_v24 = vld [vmem:[#allocation5 + $0x78] sm:$0xff]  ;;  %s703_s7 = sshll.u32 %s794_s15, 4  ;;  %s704_s7 = int_to_ptr.vmem [resolvable:$false] %s703_s7 }
  0x60   : > { %v558_v22 = vpack.c.bf16 %v265_v21, %v264_v20  ;;  %v561_v25 = vpack.c.bf16 %v267_v24, %v266_v23  ;;  %v251_v26 = vld [vmem:[%s970_s4] sm:$0xff]  ;;  %p701_p6 = pnand %p700_p4, %p911_p10  ;;  %s705_s8 = scalar_lea.vmem %s704_s7, 256 }
  0x61   : > { %v482_v27 = vld [vmem:[%s1041_s2] ss:$0 sm:$0xff]  ;;  %p706_p12 = scmp.lt.s32.totalorder %s992_s10, %s704_s7  ;;  %p707_p11 = scmp.lt.s32.totalorder %s705_s8, %s699_s26 }
  0x62   : > { %p702_p8 = pneg %p701_p6 }
  0x63   : > { %p708_p0 = por %p707_p11, %p706_p12 }
  0x65   : > { %p709_p5 = pnand %p708_p0, %p702_p8 }
  0x66   : > { %544 = vmatpush3.bf16.xpose.msra.mxu0 %v543_v7 }
  0x67   : > { %545 = vmatprep.subr.bf16.mxu0 %v791_v0 }
  0x6e   : > { %547 = vmatpush3.bf16.xpose.msra.mxu0 %v546_v10 }
  0x6f   : > { %548 = vmatprep.subr.bf16.mxu0 %v791_v0 }
  0x76   : > { %550 = vmatpush3.bf16.xpose.msra.mxu0 %v549_v13 }
  0x77   : > { %551 = vmatprep.subr.bf16.mxu0 %v791_v0 }
  0x7e   : > { %553 = vmatpush3.bf16.xpose.msra.mxu0 %v552_v16 }
  0x7f   : > { %554 = vmatprep.subr.bf16.mxu0 %v791_v0 }
  0x86   : > { %556 = vmatpush3.bf16.xpose.msra.mxu0 %v555_v19 }
  0x87   : > { %557 = vmatprep.subr.bf16.mxu0 %v791_v0 }
  0x8e   : > { %559 = vmatpush3.bf16.xpose.msra.mxu0 %v558_v22 }
  0x8f   : > { %560 = vmatprep.subr.bf16.mxu0 %v791_v0 }
  0x96   : > { %562 = vmatpush3.bf16.xpose.msra.mxu0 %v561_v25 }
  0x9d   : > { %537 = vmatmul.mubr.f32.vlgmr.msra.gmra.mrb[0].mxu0 %v251_v26 }
 0x170   : > { %v341_v28 = vpop.f32.mrb[0].mxu0 }
 0x171   : > { %v342_v29 = vadd.f32 %v482_v27, %v341_v28  ;;  %v538_v30 = vpop.f32.mrb[1].mxu0 }
 0x173   : > { %345 = vst [vmem:[%s246_s9] sm:$0xff] %v342_v29 }
 0x174   : > { %712 = shalt.err (!%p709_p5)
}
 0x175   : > { %s713_s21 = scalar_lea.hbm %s990_s29, 128  ;;  %s717_s27 = scalar_lea.hbm %s1042_s3, 256 }
 0x176   : > { %p714_p9 = scmp.ne.s32.totalorder %s990_s29, %s713_s21  ;;  %p718_p7 = scmp.lt.u32.totalorder %s990_s29, %s1042_s3 }
 0x177   : > { %p719_p3 = scmp.lt.u32.totalorder %s717_s27, %s713_s21  ;;  %p721_p4 = scmp.lt.u32.totalorder %s713_s21, %s990_s29 }
 0x178   : > { %p715_p1 = pnand %p714_p9, %p911_p10 }
 0x179   : > { %p720_p13 = por %p719_p3, %p718_p7 }
 0x17a   : > { %p716_p2 = pneg %p715_p1 }
 0x17b   : > { %p722_p6 = por %p721_p4, %p720_p13 }
 0x17d   : > { %p723_p8 = pnand %p722_p6, %p716_p2 }
 0x17f   : > { %726 = shalt.err (!%p723_p8)
}
 0x180   : > { %569 = dma.vmem_to_hbm [thread:$0]  (%p911_p10), %s992_s10, 128, %s990_s29, %s347_s6  }
 0x181 PF: > { %s373_s22 = sand.u32 1, %s765_s12   ;;  %p1060_p12 = scmp.ne.s32.totalorder %s1050_s23, 0 }
 0x182   : > { %p1061_p11 = scmp.ge.s32.totalorder %s785_s17, 2  ;;  %s374_s24 = scalar_lea.sflag [#allocation4], %s373_s22 }
 0x184   : > { %p580_p0 = pnand %p1061_p11, %p1060_p12 }
 0x186   : > { %760 = dma.done.wait (!%p580_p0), %s374_s24, 128  }
 0x187   : > { %762 = vsyncadd (!%p580_p0), %s374_s24, 4294967168  ;;  %s20_s17 = sadd.s32 1, %s785_s17   ;;  %s1062_s12 = smov %s769_s13 }
 0x188   : > { %p17_p5 = scmp.ge.s32.totalorder %s20_s17, 4   ;;  %s1063_s13 = smov %s773_s14 }
 0x189   : > { %s1064_s14 = smov %s920_s5  ;;  %s1065_s15 = smov %s781_s16 }
 0x18a   : > { %s1066_s16 = smov %s1068_s28  ;;  %19 = sbr.rel (!%p17_p5) target bundleno = 7 (0x7), region = 85 }
 0x191   :  { %379 = vsyncpa [#allocation3], 1 }
 0x192   :  { %381 = vsyncpa [#allocation3 + $0x1], 1 }
 0x193   :  { %382 = vsyncpa [#allocation6], 1 }
 0x194   :  { %383 = vsyncpa [#allocation4], 1 }
 0x195   :  { %385 = vsyncpa [#allocation4 + $0x1], 1 }

</bundles_post_ra>
